<compile_context>
chip_gen: v7x
topology: tpu7x:2x2x1
jax: 0.10.0
libtpu: 0.0.40
codegen_flags: <defaults>
</compile_context>

<pallas_src>
import functools
import math

import jax
import jax.numpy as jnp
from jax import lax
from jax.experimental import pallas as pl
from jax.experimental.pallas import tpu as pltpu

TEMPERATURE = 0.07

_LANE = 128               # vreg lane width (last dim)
_SUBLANE = 8              # vreg sublane width for f32 (second-to-last dim)
_MONOLITHIC_MAX_B = 1024  # 4*B^2 f32 sim stays well inside scoped VMEM
_DEFAULT_BLOCK_B = 256    # row/col tile for the large-batch tiled path


def _round_up(x, m):
    return (x + m - 1) // m * m


def _row_scale(f, inv_sqrt_temp):
    """1/max(||row||_2, 1e-12) * 1/sqrt(temperature) via EUP rsqrt + 1 NR step."""
    ss = jnp.sum(f * f, axis=1, keepdims=True)
    ss = jnp.maximum(ss, jnp.float32(1e-24))  # == clamping the norm at 1e-12
    inv = lax.rsqrt(ss)
    # One Newton-Raphson refinement so accuracy does not depend on the HW
    # rsqrt approximation quality (cost: a few ops on a (B,1) vector).
    inv = inv * (jnp.float32(1.5) - jnp.float32(0.5) * ss * inv * inv)
    return inv * jnp.float32(inv_sqrt_temp)


# --------------------------------------------------------------------------
# Monolithic path (small B): everything in one gridless pallas_call.
# --------------------------------------------------------------------------
def _scl_monolithic_kernel(feat_ref, lab_col_ref, lab_row_ref, out_ref, *,
                           inv_sqrt_temp, b_real, matmul_dtype):
    f = feat_ref[...].astype(jnp.float32)                      # (Bp, Dp)
    f = f * _row_scale(f, inv_sqrt_temp)                       # normalize * T^-1/2

    fm = f.astype(matmul_dtype)
    # sim[i,j] = <f_i, f_j> / temperature  (scale already folded into f)
    sim = lax.dot_general(fm, fm, (((1,), (1,)), ((), ())),
                          preferred_element_type=jnp.float32)  # (Bp, Bp)

    bp = sim.shape[0]
    row = lax.broadcasted_iota(jnp.int32, (bp, bp), 0)
    col = lax.broadcasted_iota(jnp.int32, (bp, bp), 1)
    # Kill the diagonal (masked_fill(eye, -1e9)) and every padded column so
    # padding contributes exp(-1e9) == 0 to the softmax denominator.
    kill = (row == col) | (col >= b_real)
    sim = jnp.where(kill, jnp.float32(-1.0e9), sim)

    same = lab_col_ref[...] == lab_row_ref[...]                # (Bp, Bp)
    mask_pos = jnp.where(kill | (row >= b_real), jnp.float32(0.0),
                         same.astype(jnp.float32))

    num_pos = jnp.sum(mask_pos, axis=1, keepdims=True)         # (Bp, 1)
    denom = jnp.sum(jnp.exp(sim), axis=1, keepdims=True)       # (Bp, 1)
    masked_sim_sum = jnp.sum(mask_pos * sim, axis=1, keepdims=True)

    # sum(mask*(sim - log(denom))) == sum(mask*sim) - num_pos*log(denom):
    # no BxB log_probs temporary.
    mean_log_prob_pos = (masked_sim_sum - num_pos * jnp.log(denom)) / (
        num_pos + jnp.float32(1e-8))

    valid = (num_pos > 0).astype(jnp.float32)                  # (Bp, 1)
    cnt = jnp.sum(valid)
    total = jnp.sum(mean_log_prob_pos * valid)
    loss = jnp.where(cnt > 0, -total / jnp.maximum(cnt, jnp.float32(1.0)),
                     jnp.float32(0.0))
    out_ref[...] = jnp.full((1, 1), loss, dtype=jnp.float32)


def _scl_monolithic(features, labels, temperature, matmul_dtype):
    b, d = features.shape
    bp = _round_up(b, _SUBLANE)
    dp = _round_up(d, _LANE)   # lane-dense feature layout
    inv_sqrt_temp = 1.0 / math.sqrt(float(temperature))

    f = jnp.pad(features.astype(jnp.float32), ((0, bp - b), (0, dp - d)))
    lab = jnp.pad(labels.astype(jnp.int32), (0, bp - b), constant_values=-1)

    cost = pl.CostEstimate(
        flops=2 * bp * bp * dp,
        transcendentals=bp * bp + bp,          # exp over sim + log/rsqrt per row
        bytes_accessed=4 * bp * dp + 2 * 4 * bp + 4,
    )
    out = pl.pallas_call(
        functools.partial(_scl_monolithic_kernel,
                          inv_sqrt_temp=inv_sqrt_temp, b_real=b,
                          matmul_dtype=matmul_dtype),
        out_shape=jax.ShapeDtypeStruct((1, 1), jnp.float32),
        in_specs=[
            pl.BlockSpec(memory_space=pltpu.MemorySpace.VMEM),
            pl.BlockSpec(memory_space=pltpu.MemorySpace.VMEM),
            pl.BlockSpec(memory_space=pltpu.MemorySpace.VMEM),
        ],
        # (1,1) scalar output stays in VMEM: an SMEM output would save one
        # masked 1-lane store but is negligible at this size.
        out_specs=pl.BlockSpec(memory_space=pltpu.MemorySpace.VMEM),
        cost_estimate=cost,
    )(f, lab.reshape(bp, 1), lab.reshape(1, bp))
    return out[0, 0]


# --------------------------------------------------------------------------
# Tiled path (large B): normalize -> flash-softmax-style accumulate -> finalize.
# --------------------------------------------------------------------------
def _normalize_kernel(feat_ref, out_ref, *, inv_sqrt_temp):
    f = feat_ref[...].astype(jnp.float32)
    out_ref[...] = (f * _row_scale(f, inv_sqrt_temp)).astype(out_ref.dtype)


def _scl_tiled_kernel(fq_ref, fk_ref, lab_col_ref, lab_row_ref,
                      contrib_ref, valid_ref,
                      denom_acc, msum_acc, npos_acc, *, b_real, block_b):
    i = pl.program_id(0)
    j = pl.program_id(1)

    @pl.when(j == 0)
    def _():
        denom_acc[...] = jnp.zeros_like(denom_acc)
        msum_acc[...] = jnp.zeros_like(msum_acc)
        npos_acc[...] = jnp.zeros_like(npos_acc)

    sim = lax.dot_general(fq_ref[...], fk_ref[...], (((1,), (1,)), ((), ())),
                          preferred_element_type=jnp.float32)   # (tq, tk)

    row_g = i * block_b + lax.broadcasted_iota(jnp.int32, sim.shape, 0)
    col_g = j * block_b + lax.broadcasted_iota(jnp.int32, sim.shape, 1)
    kill = (row_g == col_g) | (col_g >= b_real)
    sim = jnp.where(kill, jnp.float32(-1.0e9), sim)

    same = lab_col_ref[...] == lab_row_ref[...]                 # (tq, tk)
    mask_pos = jnp.where(kill | (row_g >= b_real), jnp.float32(0.0),
                         same.astype(jnp.float32))

    # Online accumulation across column tiles. No running-max rescaling is
    # needed: features are L2-normalized so |sim| <= 1/temperature and exp()
    # stays finite in f32.
    denom_acc[...] += jnp.sum(jnp.exp(sim), axis=1, keepdims=True)
    msum_acc[...] += jnp.sum(mask_pos * sim, axis=1, keepdims=True)
    npos_acc[...] += jnp.sum(mask_pos, axis=1, keepdims=True)

    @pl.when(j == pl.num_programs(1) - 1)
    def _():
        num_pos = npos_acc[...]
        mean_lp = (msum_acc[...] - num_pos * jnp.log(denom_acc[...])) / (
            num_pos + jnp.float32(1e-8))
        valid = (num_pos > 0).astype(jnp.float32)
        contrib_ref[...] = mean_lp * valid
        valid_ref[...] = valid


def _finalize_kernel(contrib_ref, valid_ref, out_ref):
    total = jnp.sum(contrib_ref[...])
    cnt = jnp.sum(valid_ref[...])
    loss = jnp.where(cnt > 0, -total / jnp.maximum(cnt, jnp.float32(1.0)),
                     jnp.float32(0.0))
    out_ref[...] = jnp.full((1, 1), loss, dtype=jnp.float32)


def _scl_tiled(features, labels, temperature, block_b, matmul_dtype):
    b, d = features.shape
    bp = _round_up(b, block_b)
    dp = _round_up(d, _LANE)
    n_b = bp // block_b
    inv_sqrt_temp = 1.0 / math.sqrt(float(temperature))

    f = jnp.pad(features.astype(jnp.float32), ((0, bp - b), (0, dp - d)))
    lab = jnp.pad(labels.astype(jnp.int32), (0, bp - b), constant_values=-1)
    lab_col = lab.reshape(bp, 1)
    lab_row = lab.reshape(1, bp)

    # 1) Row-parallel L2 normalize with 1/sqrt(temperature) folded in.
    f_n = pl.pallas_call(
        functools.partial(_normalize_kernel, inv_sqrt_temp=inv_sqrt_temp),
        out_shape=jax.ShapeDtypeStruct((bp, dp), matmul_dtype),
        grid_spec=pltpu.PrefetchScalarGridSpec(
            num_scalar_prefetch=0,
            grid=(n_b,),
            in_specs=[pl.BlockSpec((block_b, dp), lambda i: (i, 0))],
            out_specs=pl.BlockSpec((block_b, dp), lambda i: (i, 0)),
        ),
        compiler_params=pltpu.CompilerParams(dimension_semantics=("parallel",)),
    )(f)

    # 2) Row tiles independent ("parallel", megacore-shardable); column tiles
    #    are the trailing "arbitrary" reduction axis with VMEM accumulators.
    cost = pl.CostEstimate(
        flops=2 * bp * bp * dp,
        transcendentals=bp * bp + bp,
        bytes_accessed=4 * bp * dp * (n_b + 1) + 2 * 4 * bp,
    )
    contrib, valid = pl.pallas_call(
        functools.partial(_scl_tiled_kernel, b_real=b, block_b=block_b),
        out_shape=(jax.ShapeDtypeStruct((bp, 1), jnp.float32),
                   jax.ShapeDtypeStruct((bp, 1), jnp.float32)),
        grid_spec=pltpu.PrefetchScalarGridSpec(
            num_scalar_prefetch=0,
            grid=(n_b, n_b),
            in_specs=[
                pl.BlockSpec((block_b, dp), lambda i, j: (i, 0)),   # query rows
                pl.BlockSpec((block_b, dp), lambda i, j: (j, 0)),   # key rows
                pl.BlockSpec((block_b, 1), lambda i, j: (i, 0)),    # labels (col)
                pl.BlockSpec((1, block_b), lambda i, j: (0, j)),    # labels (row)
            ],
            out_specs=[
                pl.BlockSpec((block_b, 1), lambda i, j: (i, 0)),
                pl.BlockSpec((block_b, 1), lambda i, j: (i, 0)),
            ],
            scratch_shapes=[pltpu.VMEM((block_b, 1), jnp.float32)] * 3,
        ),
        compiler_params=pltpu.CompilerParams(
            dimension_semantics=("parallel", "arbitrary")),
        cost_estimate=cost,
    )(f_n, f_n, lab_col, lab_row)

    # 3) Tiny finalize: global masked mean of the per-row log-prob means.
    out = pl.pallas_call(
        _finalize_kernel,
        out_shape=jax.ShapeDtypeStruct((1, 1), jnp.float32),
        in_specs=[pl.BlockSpec(memory_space=pltpu.MemorySpace.VMEM)] * 2,
        out_specs=pl.BlockSpec(memory_space=pltpu.MemorySpace.VMEM),
    )(contrib, valid)
    return out[0, 0]


# --------------------------------------------------------------------------
# Public wrapper
# --------------------------------------------------------------------------
def supervised_contrastive_loss(features, labels, temperature=TEMPERATURE, *,
                                matmul_dtype=jnp.float32, block_b=None):
    """features: [B, D] float, labels: [B] int -> scalar float32 loss.

    matmul_dtype: set to jnp.bfloat16 for the fast MXU path on v6e/v7x (all
      elementwise math stays f32, which also suits v5e). Default f32 matches
      the f32 PyTorch reference closely.
    block_b: force the tiled flash-softmax path with this row/col tile
      (multiple of 128). By default the tiled path is used only when the
      padded batch exceeds _MONOLITHIC_MAX_B.
    """
    b, _ = features.shape
    if block_b is None:
        if _round_up(b, _SUBLANE) <= _MONOLITHIC_MAX_B:
            return _scl_monolithic(features, labels, temperature, matmul_dtype)
        block_b = _DEFAULT_BLOCK_B
    return _scl_tiled(features, labels, temperature, block_b, matmul_dtype)


def _reference(features, labels, temperature=TEMPERATURE):
    # pure-JAX reference (mirrors the PyTorch module) for sanity checking
    f = features.astype(jnp.float32)
    f = f / jnp.maximum(jnp.linalg.norm(f, axis=1, keepdims=True), 1e-12)
    sim = (f @ f.T) / temperature
    b = f.shape[0]
    eye = jnp.eye(b, dtype=bool)
    sim = jnp.where(eye, -1.0e9, sim)
    lab = labels.reshape(-1, 1)
    mask_pos = (lab == lab.T).astype(jnp.float32)
    mask_pos = jnp.where(eye, 0.0, mask_pos)
    num_pos = mask_pos.sum(1)
    denom = jnp.exp(sim).sum(1, keepdims=True)
    log_probs = sim - jnp.log(denom)
    mean_lp = (mask_pos * log_probs).sum(1) / (num_pos + 1e-8)
    valid = num_pos > 0
    cnt = valid.sum()
    return jnp.where(cnt > 0, -(mean_lp * valid).sum() / jnp.maximum(cnt, 1), 0.0)


if __name__ == "__main__":
    key = jax.random.PRNGKey(0)
    kf, kl = jax.random.split(key)

    # Small batch -> monolithic single-invocation path.
    B, D = 8, 32
    features = jax.random.normal(kf, (B, D), dtype=jnp.float32)
    labels = jax.random.randint(kl, (B,), 0, 4, dtype=jnp.int32)
    loss = supervised_contrastive_loss(features, labels)
    jax.block_until_ready(loss)
    ref = _reference(features, labels)
    assert jnp.allclose(loss, ref, rtol=1e-4, atol=1e-4), (loss, ref)

    # Force the tiled flash-softmax path (used automatically for large B) so
    # the grid / scratch / padding machinery is exercised and checked too.
    kf2, kl2 = jax.random.split(jax.random.PRNGKey(1))
    B2, D2 = 200, 64
    features2 = jax.random.normal(kf2, (B2, D2), dtype=jnp.float32)
    labels2 = jax.random.randint(kl2, (B2,), 0, 10, dtype=jnp.int32)
    loss2 = supervised_contrastive_loss(features2, labels2, block_b=128)
    jax.block_until_ready(loss2)
    ref2 = _reference(features2, labels2)
    assert jnp.allclose(loss2, ref2, rtol=1e-4, atol=1e-4), (loss2, ref2)

    print("KERNEL_OK")
</pallas_src>

<mosaic_0001>
module attributes {stable_mosaic.version = 11 : i64} {
  func.func @_scl_monolithic_kernel(%arg0: memref<8x128xf32, #tpu.memory_space<vmem>>, %arg1: memref<8x1xi32, #tpu.memory_space<vmem>>, %arg2: memref<1x8xi32, #tpu.memory_space<vmem>>, %arg3: memref<1x1xf32, #tpu.memory_space<vmem>>) attributes {dimension_semantics = [], scalar_prefetch = 0 : i64, scratch_operands = 0 : i64, tpu.core_type = #tpu.core_type<tc>} {
    %c0 = arith.constant 0 : index
    %c0_0 = arith.constant 0 : index
    %0 = vector.load %arg0[%c0, %c0_0] : memref<8x128xf32, #tpu.memory_space<vmem>>, vector<8x128xf32>
    %1 = arith.mulf %0, %0 : vector<8x128xf32>
    %cst = arith.constant dense<0.000000e+00> : vector<8xf32>
    %2 = vector.multi_reduction <add>, %1, %cst [1] : vector<8x128xf32> to vector<8xf32>
    %3 = vector.shape_cast %2 : vector<8xf32> to vector<8x1xf32>
    %cst_1 = arith.constant 1.000000e-24 : f32
    %4 = vector.broadcast %cst_1 : f32 to vector<8x1xf32>
    %5 = arith.maximumf %3, %4 : vector<8x1xf32>
    %6 = math.rsqrt %5 : vector<8x1xf32>
    %cst_2 = arith.constant 5.000000e-01 : f32
    %7 = vector.broadcast %cst_2 : f32 to vector<8x1xf32>
    %8 = arith.mulf %7, %5 : vector<8x1xf32>
    %9 = arith.mulf %8, %6 : vector<8x1xf32>
    %10 = arith.mulf %9, %6 : vector<8x1xf32>
    %cst_3 = arith.constant 1.500000e+00 : f32
    %11 = vector.broadcast %cst_3 : f32 to vector<8x1xf32>
    %12 = arith.subf %11, %10 : vector<8x1xf32>
    %13 = arith.mulf %6, %12 : vector<8x1xf32>
    %cst_4 = arith.constant 3.77964473 : f32
    %14 = vector.broadcast %cst_4 : f32 to vector<8x1xf32>
    %15 = arith.mulf %13, %14 : vector<8x1xf32>
    %16 = vector.broadcast %15 : vector<8x1xf32> to vector<8x128xf32>
    %17 = arith.mulf %0, %16 : vector<8x128xf32>
    %cst_5 = arith.constant dense<0.000000e+00> : vector<8x8xf32>
    %18 = tpu.matmul %17, %17, %cst_5 {dimension_numbers = #tpu.dot_dimension_numbers<[1], [1], [0], [0], [0, 0, 1, 0], [], []>} : vector<8x128xf32>, vector<8x128xf32>, vector<8x8xf32> -> vector<8x8xf32>
    %19 = tpu.iota {dimensions = array<i32: 0>} : vector<8x8xi32>
    %20 = tpu.iota {dimensions = array<i32: 1>} : vector<8x8xi32>
    %21 = arith.cmpi eq, %19, %20 : vector<8x8xi32>
    %c8_i32 = arith.constant 8 : i32
    %22 = vector.broadcast %c8_i32 : i32 to vector<8x8xi32>
    %23 = arith.cmpi sge, %20, %22 : vector<8x8xi32>
    %24 = arith.ori %21, %23 : vector<8x8xi1>
    %cst_6 = arith.constant -1.000000e+09 : f32
    %25 = vector.broadcast %cst_6 : f32 to vector<8x8xf32>
    %26 = arith.select %24, %25, %18 : vector<8x8xi1>, vector<8x8xf32>
    %c0_7 = arith.constant 0 : index
    %c0_8 = arith.constant 0 : index
    %27 = vector.load %arg1[%c0_7, %c0_8] : memref<8x1xi32, #tpu.memory_space<vmem>>, vector<8x1xi32>
    %c0_9 = arith.constant 0 : index
    %c0_10 = arith.constant 0 : index
    %28 = vector.load %arg2[%c0_9, %c0_10] : memref<1x8xi32, #tpu.memory_space<vmem>>, vector<1x8xi32>
    %29 = vector.broadcast %27 : vector<8x1xi32> to vector<8x8xi32>
    %30 = vector.broadcast %28 : vector<1x8xi32> to vector<8x8xi32>
    %31 = arith.cmpi eq, %29, %30 : vector<8x8xi32>
    %c8_i32_11 = arith.constant 8 : i32
    %32 = vector.broadcast %c8_i32_11 : i32 to vector<8x8xi32>
    %33 = arith.cmpi sge, %19, %32 : vector<8x8xi32>
    %34 = arith.ori %24, %33 : vector<8x8xi1>
    %35 = arith.extui %31 : vector<8x8xi1> to vector<8x8xi32>
    %36 = arith.sitofp %35 : vector<8x8xi32> to vector<8x8xf32>
    %cst_12 = arith.constant 0.000000e+00 : f32
    %37 = vector.broadcast %cst_12 : f32 to vector<8x8xf32>
    %38 = arith.select %34, %37, %36 : vector<8x8xi1>, vector<8x8xf32>
    %cst_13 = arith.constant dense<0.000000e+00> : vector<8xf32>
    %39 = vector.multi_reduction <add>, %38, %cst_13 [1] : vector<8x8xf32> to vector<8xf32>
    %40 = vector.shape_cast %39 : vector<8xf32> to vector<8x1xf32>
    %41 = math.exp %26 : vector<8x8xf32>
    %cst_14 = arith.constant dense<0.000000e+00> : vector<8xf32>
    %42 = vector.multi_reduction <add>, %41, %cst_14 [1] : vector<8x8xf32> to vector<8xf32>
    %43 = vector.shape_cast %42 : vector<8xf32> to vector<8x1xf32>
    %44 = arith.mulf %38, %26 : vector<8x8xf32>
    %cst_15 = arith.constant dense<0.000000e+00> : vector<8xf32>
    %45 = vector.multi_reduction <add>, %44, %cst_15 [1] : vector<8x8xf32> to vector<8xf32>
    %46 = vector.shape_cast %45 : vector<8xf32> to vector<8x1xf32>
    %47 = math.log %43 : vector<8x1xf32>
    %48 = arith.mulf %40, %47 : vector<8x1xf32>
    %49 = arith.subf %46, %48 : vector<8x1xf32>
    %cst_16 = arith.constant 9.99999993E-9 : f32
    %50 = vector.broadcast %cst_16 : f32 to vector<8x1xf32>
    %51 = arith.addf %40, %50 : vector<8x1xf32>
    %52 = arith.divf %49, %51 : vector<8x1xf32>
    %cst_17 = arith.constant 0.000000e+00 : f32
    %53 = vector.broadcast %cst_17 : f32 to vector<8x1xf32>
    %54 = arith.cmpf ogt, %40, %53 : vector<8x1xf32>
    %55 = arith.extui %54 : vector<8x1xi1> to vector<8x1xi32>
    %56 = arith.sitofp %55 : vector<8x1xi32> to vector<8x1xf32>
    %57 = vector.shape_cast %56 : vector<8x1xf32> to vector<1x8x1xf32>
    %cst_18 = arith.constant dense<0.000000e+00> : vector<1xf32>
    %58 = vector.multi_reduction <add>, %57, %cst_18 [1, 2] : vector<1x8x1xf32> to vector<1xf32>
    %59 = vector.shape_cast %58 : vector<1xf32> to vector<1x1x1xf32>
    %60 = vector.extract %59[0, 0, 0] : f32 from vector<1x1x1xf32>
    %61 = arith.mulf %52, %56 : vector<8x1xf32>
    %62 = vector.shape_cast %61 : vector<8x1xf32> to vector<1x8x1xf32>
    %cst_19 = arith.constant dense<0.000000e+00> : vector<1xf32>
    %63 = vector.multi_reduction <add>, %62, %cst_19 [1, 2] : vector<1x8x1xf32> to vector<1xf32>
    %64 = vector.shape_cast %63 : vector<1xf32> to vector<1x1x1xf32>
    %65 = vector.extract %64[0, 0, 0] : f32 from vector<1x1x1xf32>
    %cst_20 = arith.constant 0.000000e+00 : f32
    %66 = arith.cmpf ogt, %60, %cst_20 : f32
    %cst_21 = arith.constant 0.000000e+00 : f32
    %67 = arith.subf %cst_21, %65 : f32
    %cst_22 = arith.constant 1.000000e+00 : f32
    %68 = arith.maximumf %60, %cst_22 : f32
    %69 = arith.divf %67, %68 : f32
    %cst_23 = arith.constant 0.000000e+00 : f32
    %70 = arith.select %66, %69, %cst_23 : f32
    %71 = vector.broadcast %70 : f32 to vector<1x1xf32>
    %c0_24 = arith.constant 0 : index
    %c0_25 = arith.constant 0 : index
    %72 = vector.load %arg3[%c0_24, %c0_25] : memref<1x1xf32, #tpu.memory_space<vmem>>, vector<1x1xf32>
    tpu.vector_store %arg3[%c0_24, %c0_25], %71 {strides = array<i32>} : memref<1x1xf32, #tpu.memory_space<vmem>>, vector<1x1xf32>,
    return
  }
}

</mosaic_0001>

<bundles_post_ra>
// kernel: tpu_custom_call.1
= control target key start
LH: loop header
LB: loop body
LE: loop exit
PB: predicated region body
PF: predicated region fallthrough
CT: control target
= control target key end

     0   :  { %s298_s0 = inlined_call_operand.vmem [shape: f32[8,128], index: 0, kind: input, shape index: {}]   ;;  %s299_s1 = inlined_call_operand.vmem [shape: s32[8,1], index: 1, kind: input, shape index: {}]   ;;  %s300_s2 = inlined_call_operand.vmem [shape: s32[1,8], index: 2, kind: input, shape index: {}]   ;;  %s301_s3 = inlined_call_operand.hbm [shape: f32[1,1], index: 3, kind: output, shape index: {}]  }
   0x1   :  { %v15_v0 = vld [vmem:[%s298_s0] sm:$0xff] }
   0x2   :  { %8 = vsyncpa [#allocation3], 0  ;;  %v16_v1 = vmul.f32 %v15_v0, %v15_v0  ;;  %v247_v2 = vmov 0.0   ;;  %vm248_vm0 = vmmov 0   ;;  %v106_v3 = vld [vmem:[%s299_s1] sm:$0xff]  ;;  %v249_v4 = vmov 0  }
   0x3   :  { %196 = vmatprep.subr.mxu0 %v247_v2  ;;  %198 = vmatprep.mubr.msk.f32.mxu0 %vm248_vm0, %v247_v2  ;;  %v98_v12 = vlaneseq  ;;  %v191_v18 = vld [vmem:[%s300_s2] ss:$0 sm:$0xff]  ;;  %vm121_vm5 = vcmask 64512   ;;  %vm144_vm7 = vcmask 7168   ;;  %s250_s16 = smov 1.0   ;;  %s251_s22 = smov [#allocation2]  }
   0x4   :  { %17 = vadd.xlane.f32.xlu0 %v16_v1  ;;  %s183_s23 = sshll.u32 %s251_s22, 4  ;;  %vm175_vm8 = vcmask 0   ;;  %s184_s23 = int_to_ptr.vmem [resolvable:$true] %s183_s23 }
   0x5   :  { %212 = vset.pattern.permute.xlu0 %v249_v4  ;;  %v99_v15 = vshrl.u32 %v98_v12, 7  ;;  %v101_v16 = vand.u32 127, %v98_v12  ;;  %s223_s24 = scalar_lea.vmem %s184_s23, 16  ;;  %s227_s25 = scalar_lea.vmem %s184_s23, 32 }
   0x6   :  { %p224_p1 = scmp.ne.s32.totalorder %s184_s23, %s223_s24  ;;  %p228_p2 = scmp.lt.s32.totalorder %s184_s23, %s184_s23 }
   0x7   :  { %vm102_vm1 = vcmp.eq.s32.totalorder %v99_v15, %v101_v16  ;;  %vm103_vm2 = vcmp.ge.s32.totalorder %v101_v16, 8  ;;  %p229_p3 = scmp.lt.s32.totalorder %s227_s25, %s223_s24 }
   0x8   :  { %vm104_vm3 = vmor %vm102_vm1, %vm103_vm2 }
   0x9   :  { %p230_p4 = por %p229_p3, %p228_p2 }
   0xb   :  { %p231_p5 = pnand %p230_p4, %p224_p1 }
  0x1a   :  { %109 = vperm.xlu0 %212, %v106_v3  }
  0x91   :  { %v18_v5 = vpop.xlane.xlu0 %17 }
  0x92   :  { %v19_v6 = vmax.f32 %v18_v5, 1e-24 }
  0x94   :  { %213 = vrsqrt.f32 %v19_v6  ;;  %v21_v7 = vmul.f32 0.5, %v19_v6 }
  0x99   :  { %v110_v19 = vpop.permute.xlu0 %109 }
  0x9a   :  { %vm115_vm4 = vcmp.eq.s32.totalorder %v110_v19, %v191_v18 }
  0x9b   :  { %v192_v20 = vsel %vm115_vm4, 1.0, %v247_v2 }
  0x9c   :  { %v120_v21 = vsel %vm104_vm3, 0.0, %v192_v20 }
  0x9d   :  { %v122_v22 = vsel %vm121_vm5, %v120_v21, 0.0 }
  0x9e   :  { %v214_v8 = vpop.eup %213  ;;  %123 = vadd.xlane.f32.xlu1 %v122_v22 }
  0x9f   :  { %v22_v9 = vmul.f32 %v214_v8, %v21_v7 }
  0xa1   :  { %v23_v10 = vmul.f32 %v214_v8, %v22_v9 }
  0xa3   :  { %v24_v11 = vsub.f32 1.5, %v23_v10 }
  0xa5   :  { %v25_v13 = vmul.f32 %v214_v8, %v24_v11 }
  0xa7   :  { %v26_v14 = vmul.f32 3.7796447, %v25_v13 }
  0xa9   :  { %v27_v17 = vmul.f32 %v26_v14, %v15_v0 }
  0xab   :  { %197 = vmatpush3.xpose.msra.mxu0 %v27_v17 }
  0xae   :  { %199 = vmatmul.mubr.f32.vlgmr.msra.gmra.mrb[0].mxu0 %v27_v17 }
 0x12b   :  { %v124_v27 = vpop.xlane.xlu1 %123 }
 0x12c   :  { %vm141_vm6 = vcmp.gt.f32.partialorder %v124_v27, 0.0  ;;  %v138_v35 = vadd.f32 1e-08, %v124_v27 }
 0x12d   :  { %v193_v31 = vsel %vm141_vm6, 1.0, %v247_v2 }
 0x12e   :  { %v145_v33 = vsel %vm144_vm7, %v193_v31, 0.0 }
 0x181   :  { %v94_v23 = vpop.f32.mrb[0].mxu0 }
 0x182   :  { %v105_v24 = vsel %vm104_vm3, -1e+09, %v94_v23  ;;  %v200_v25 = vpop.f32.mrb[1].mxu0 }
 0x183   :  { %v125_v26 = vmul.f32 1.442695, %v105_v24  ;;  %v130_v29 = vmul.f32 %v120_v21, %v105_v24 }
 0x185   :  { %215 = vpow2.f32 %v125_v26  ;;  %v131_v32 = vsel %vm121_vm5, %v130_v29, 0.0 }
 0x18f   :  { %v216_v28 = vpop.eup %215 }
 0x190   :  { %v127_v30 = vsel %vm121_vm5, %v216_v28, 0.0 }
 0x191   :  { %128 = vadd.xlane.f32.xlu1 %v127_v30 }
 0x195   :  { %132 = vadd.xlane.f32.xlu1 %v131_v32 }
 0x199   :  { %146 = vadd.xlane.f32.xlu1 %v145_v33 }
 0x21e   :  { %v129_v34 = vpop.xlane.xlu1 %128 }
 0x21f   :  { %217 = vlog2.f32 %v129_v34 }
 0x220   :  { %219 = vrcp.f32 %v138_v35 }
 0x222   :  { %v133_v36 = vpop.xlane.xlu1 %132 }
 0x226   :  { %v147_v37 = vpop.xlane.xlu1 %146 }
 0x227   :  { %v148_v38 = vrot.slane %v147_v37, 4 }
 0x229   :  { %v218_v39 = vpop.eup %217  ;;  %v149_v40 = vadd.f32 %v148_v38, %v147_v37 }
 0x22a   :  { %v135_v41 = vmul.f32 0.6931472, %v218_v39  ;;  %v220_v46 = vpop.eup %219 }
 0x22b   :  { %v150_v42 = vrot.slane %v149_v40, 2 }
 0x22c   :  { %v136_v43 = vmul.f32 %v135_v41, %v124_v27 }
 0x22d   :  { %v151_v44 = vadd.f32 %v150_v42, %v149_v40 }
 0x22e   :  { %v137_v45 = vsub.f32 %v133_v36, %v136_v43 }
 0x22f   :  { %v152_v47 = vrot.slane %v151_v44, 1 }
 0x230   :  { %v140_v48 = vmul.f32 %v220_v46, %v137_v45 }
 0x231   :  { %v153_v49 = vadd.f32 %v152_v47, %v151_v44 }
 0x232   :  { %v155_v50 = vmul.f32 %v193_v31, %v140_v48 }
 0x233   :  { %201 = vpush %v153_v49 }
 0x234   :  { %v156_v51 = vsel %vm144_vm7, %v155_v50, 0.0 }
 0x235   :  { %157 = vadd.xlane.f32.xlu1 %v156_v51 }
 0x264   :  { %s202_s2 = spop %201 }
 0x265   :  { %s168_s17 = smax.f32 %s250_s16, %s202_s2  ;;  %p166_p0 = scmp.gt.f32.partialorder %s202_s2, 0.0 }
 0x266   :  { %v169_v52 = vstv %s168_s17 }
 0x267   :  { %221 = vrcp.f32 %v169_v52 }
 0x271   :  { %v222_v60 = vpop.eup %221 }
 0x2c2   :  { %v158_v53 = vpop.xlane.xlu1 %157 }
 0x2c3   :  { %v159_v54 = vrot.slane %v158_v53, 4 }
 0x2c5   :  { %v160_v55 = vadd.f32 %v159_v54, %v158_v53 }
 0x2c7   :  { %v161_v56 = vrot.slane %v160_v55, 2 }
 0x2c9   :  { %v162_v57 = vadd.f32 %v161_v56, %v160_v55 }
 0x2cb   :  { %v163_v58 = vrot.slane %v162_v57, 1 }
 0x2cd   :  { %v164_v59 = vadd.f32 %v163_v58, %v162_v57 }
 0x2cf   :  { %203 = vpush %v164_v59 }
 0x2d0   :  { %205 = vpush %v222_v60 }
 0x300   :  { %s204_s18 = spop %203 }
 0x301   :  { %s167_s19 = ssub.f32 0.0, %s204_s18  ;;  %s206_s20 = spop %205 }
 0x303   :  { %s172_s21 = smul.f32 %s206_s20, %s167_s19 }
 0x305   :  { %s303_s21 = smov (!%p166_p0, %s172_s21), 0.0 }
 0x306   :  { %v174_v61 = vstv %s303_s21 }
 0x307   :  { %176 = vst.msk [vmem:[#allocation2] sm:$0x1] %vm175_vm8, %v174_v61 }
 0x308   :  { %234 = shalt.err (!%p231_p5)
}
 0x309   :  { %s235_s28 = scalar_lea.hbm %s301_s3, 16 }
 0x30a   :  { %p236_p6 = scmp.ne.s32.totalorder %s301_s3, %s235_s28  ;;  %p239_p7 = scmp.lt.u32.totalorder %s235_s28, %s301_s3 }
 0x30c   :  { %p241_p8 = pnand %p239_p7, %p236_p6 }
 0x30e   :  { %244 = shalt.err (!%p241_p8)
}
 0x30f   :  { %186 = dma.vmem_to_hbm [thread:$0]  %s184_s23, 16, %s301_s3, [#allocation3]  }
 0x310   :  { %245 = dma.done.wait [#allocation3], 16  }
 0x311   :  { %246 = vsyncadd [#allocation3], 4294967280 }
 0x312   :  { %190 = vsyncpa [#allocation3], 1 }

</bundles_post_ra>
